<compile_context>
chip_gen: v7x
topology: tpu7x:2x2x1
jax: 0.10.0
libtpu: 0.0.40
codegen_flags: <defaults>
</compile_context>

<pallas_src>
import functools
import math

import jax
import jax.numpy as jnp
from jax import lax
from jax.experimental import pallas as pl
from jax.experimental.pallas import tpu as pltpu


def _round_up(x, m):
    return ((x + m - 1) // m) * m


def _vmem_capacity_bytes():
    try:
        return int(pltpu.get_tpu_info().vmem_capacity_bytes)
    except Exception:
        return 64 << 20  # conservative fallback (v7x per-core VMEM)


# ---------------------------------------------------------------------------
# Path A: table resident in VMEM, gather rows with dynamic sublane reads.
# ---------------------------------------------------------------------------
def _embed_vmem_kernel(ids_ref, table_ref, o_ref, *, scale, tile_tokens):
    """
    ids_ref   : SMEM int32 (padded_rows,)     -- scalar-prefetched token ids
    table_ref : VMEM (vocab, d_model)         -- full table, fetched once
    o_ref     : VMEM (tile_tokens, d_model)   -- output block
    """
    base = pl.program_id(0) * tile_tokens

    def body(t, carry):
        tok = ids_ref[base + t]                       # SMEM scalar read
        row = table_ref[pl.ds(tok, 1), :]             # dynamic sublane read
        o_ref[pl.ds(t, 1), :] = (row * scale).astype(o_ref.dtype)
        return carry

    lax.fori_loop(0, tile_tokens, body, 0, unroll=8)


# ---------------------------------------------------------------------------
# Path B: table in HBM, per-row DMA gather double-buffered across grid steps.
# ---------------------------------------------------------------------------
def _embed_hbm_kernel(ids_ref, table_hbm, o_ref, row_buf, sem, *,
                      scale, tile_tokens):
    """
    ids_ref   : SMEM int32 (padded_rows,)          -- scalar-prefetched ids
    table_hbm : HBM  (vocab, d_model)              -- full table (pl.ANY)
    o_ref     : VMEM (tile_tokens, d_model)        -- output block
    row_buf   : VMEM (2, tile_tokens, d_model)     -- double-buffered landing
    sem       : DMA semaphores, shape (2,)         -- one shared sem per slot
    """
    i = pl.program_id(0)
    n = pl.num_programs(0)
    slot = i % 2

    def issue_tile(tile_idx, slot_idx):
        base = tile_idx * tile_tokens

        def body(t, carry):
            tok = ids_ref[base + t]
            pltpu.make_async_copy(table_hbm.at[tok],
                                  row_buf.at[slot_idx, t],
                                  sem.at[slot_idx]).start()
            return carry

        lax.fori_loop(0, tile_tokens, body, 0, unroll=4)

    # Prime the pipeline: the very first tile's gathers.
    @pl.when(i == 0)
    def _():
        issue_tile(0, 0)

    # Prefetch the NEXT tile's rows into the other slot (ids already in SMEM)
    # so the gathers overlap this tile's scale+store and output writeback.
    @pl.when(i + 1 < n)
    def _():
        issue_tile(i + 1, 1 - slot)

    # Wait for this tile's rows.  The shared per-slot semaphore was signalled
    # once per row copy; wait once per row with a descriptor rebuilt from the
    # real token id so issue/wait accounting always matches.
    base = i * tile_tokens

    def wait_body(t, carry):
        tok = ids_ref[base + t]
        pltpu.make_async_copy(table_hbm.at[tok],
                              row_buf.at[slot, t],
                              sem.at[slot]).wait()
        return carry

    lax.fori_loop(0, tile_tokens, wait_body, 0, unroll=4)

    # One fused, lane-dense scale + store for the whole tile.
    o_ref[...] = (row_buf[slot] * scale).astype(o_ref.dtype)


# ---------------------------------------------------------------------------
# Wrapper: Embeddings.forward(x) == table[x] * sqrt(d_model)
# ---------------------------------------------------------------------------
def pallas_embeddings(ids, table, *, tile_tokens=None, force_hbm_gather=False):
    """ids: int array of any shape. table: (vocab, d_model).
    Returns (*ids.shape, d_model) with the sqrt(d_model) scaling applied."""
    vocab, d_model = (int(s) for s in table.shape)
    dtype = table.dtype
    itemsize = jnp.dtype(dtype).itemsize
    orig_shape = ids.shape
    scale = math.sqrt(float(d_model))

    # Clamp ids so an out-of-range token never turns into an OOB HBM access.
    ids_flat = jnp.clip(ids.reshape(-1).astype(jnp.int32), 0, vocab - 1)
    rows = int(ids_flat.shape[0])

    # Sublane granule for the output block: 8 rows f32, 16 bf16, 32 int8.
    sub = 8 * max(1, 4 // itemsize)

    # Tile size: fixed & aligned, ~1 MiB of output per grid step, and >= 2
    # grid steps when there is enough work (keeps both v7x cores busy).
    if tile_tokens is None:
        row_bytes = d_model * itemsize
        t = max(sub, min(512, (1 << 20) // max(row_bytes, 1)))
        half = _round_up(max(1, -(-rows // 2)), sub)
        t = min(t, half)
        tile_tokens = _round_up(max(t, sub), sub)
    else:
        tile_tokens = _round_up(max(int(tile_tokens), sub), sub)

    # Pad ids (id 0) to a whole number of tiles; padded rows are sliced off.
    padded_rows = _round_up(rows, tile_tokens)
    if padded_rows != rows:
        ids_flat = jnp.pad(ids_flat, (0, padded_rows - rows))
    grid = (padded_rows // tile_tokens,)

    out_block_bytes = tile_tokens * d_model * itemsize
    table_bytes = vocab * d_model * itemsize
    vmem_cap = _vmem_capacity_bytes()

    # Table-resident fast path if the table (counted twice, conservatively,
    # for pipeline buffering) plus the double-buffered output block fits.
    use_vmem_table = (not force_hbm_gather) and (
        2 * table_bytes + 2 * out_block_bytes <= vmem_cap // 2)

    if use_vmem_table:
        vmem_needed = 2 * table_bytes + 2 * out_block_bytes
        kernel = functools.partial(_embed_vmem_kernel, scale=scale,
                                   tile_tokens=tile_tokens)
        in_specs = [pl.BlockSpec((vocab, d_model), lambda i, ids: (0, 0))]
        scratch_shapes = []
        dim_sem = ("parallel",)
    else:
        vmem_needed = (2 * tile_tokens * d_model * itemsize
                       + 2 * out_block_bytes)
        kernel = functools.partial(_embed_hbm_kernel, scale=scale,
                                   tile_tokens=tile_tokens)
        in_specs = [pl.BlockSpec(memory_space=pl.ANY)]   # table stays in HBM
        scratch_shapes = [
            pltpu.VMEM((2, tile_tokens, d_model), dtype),
            pltpu.SemaphoreType.DMA((2,)),
        ]
        # Cross-step DMA pipelining carries scratch state between consecutive
        # grid steps -> this axis must not be megacore-split.
        dim_sem = ("arbitrary",)

    vmem_limit = int(min(int(0.9 * vmem_cap),
                         max(vmem_needed + (8 << 20), 32 << 20)))
    vmem_limit = max(vmem_limit, vmem_needed + (2 << 20))

    out = pl.pallas_call(
        kernel,
        out_shape=jax.ShapeDtypeStruct((padded_rows, d_model), dtype),
        grid_spec=pltpu.PrefetchScalarGridSpec(
            num_scalar_prefetch=1,                       # ids -> SMEM
            grid=grid,
            in_specs=in_specs,
            out_specs=pl.BlockSpec((tile_tokens, d_model),
                                   lambda i, ids: (i, 0)),
            scratch_shapes=scratch_shapes,
        ),
        compiler_params=pltpu.CompilerParams(
            dimension_semantics=dim_sem,
            vmem_limit_bytes=vmem_limit,
        ),
    )(ids_flat, table)

    if padded_rows != rows:
        out = out[:rows]
    return out.reshape(*orig_shape, d_model)


# ---------------------------------------------------------------------------
# Demo / self-test.
# ---------------------------------------------------------------------------
if __name__ == "__main__":
    key = jax.random.PRNGKey(0)
    B, T = 2, 8                # batch, sequence length
    d_model, vocab = 128, 50   # d_model multiple of 128 (lane-dense stores)

    k_ids, k_tab = jax.random.split(key)
    ids = jax.random.randint(k_ids, (B, T), 0, vocab, dtype=jnp.int32)
    table = jax.random.normal(k_tab, (vocab, d_model), dtype=jnp.float32)

    ref = table[ids] * math.sqrt(d_model)

    # Path A: table-resident VMEM fast path (auto-selected: table is tiny).
    out_a = jax.block_until_ready(pallas_embeddings(ids, table))
    assert out_a.shape == (B, T, d_model)
    assert jnp.max(jnp.abs(out_a - ref)) < 1e-5, "VMEM path mismatch"

    # Path B: HBM row-gather path with cross-step double-buffered DMAs.
    out_b = jax.block_until_ready(
        pallas_embeddings(ids, table, force_hbm_gather=True))
    assert out_b.shape == (B, T, d_model)
    assert jnp.max(jnp.abs(out_b - ref)) < 1e-5, "HBM gather path mismatch"

    print("KERNEL_OK")
</pallas_src>

<mosaic_0001>
module attributes {stable_mosaic.version = 11 : i64} {
  func.func @_embed_vmem_kernel(%arg0: i32, %arg1: memref<16xi32, #tpu.memory_space<smem>>, %arg2: memref<50x128xf32, #tpu.memory_space<vmem>>, %arg3: memref<8x128xf32, #tpu.memory_space<vmem>>) attributes {dimension_semantics = [#tpu.dimension_semantics<parallel>], iteration_bounds = array<i64: 2>, scalar_prefetch = 1 : i64, scratch_operands = 0 : i64, tpu.core_type = #tpu.core_type<tc>, window_params = [{pipeline_mode = #tpu.pipeline_mode<synchronous>, transform_indices = @transform_0, window_bounds = array<i64: 50, 128>}, {transform_indices = @transform_1, window_bounds = array<i64: 8, 128>}]} {
    %c8_i32 = arith.constant 8 : i32
    %0 = arith.muli %arg0, %c8_i32 : i32
    %c0_i32 = arith.constant 0 : i32
    %1 = arith.addi %0, %c0_i32 : i32
    %2 = arith.index_cast %1 : i32 to index
    %3 = memref.load %arg1[%2] : memref<16xi32, #tpu.memory_space<smem>>
    %4 = arith.index_cast %3 : i32 to index
    %c0 = arith.constant 0 : index
    %5 = vector.load %arg2[%4, %c0] : memref<50x128xf32, #tpu.memory_space<vmem>>, vector<1x128xf32>
    %cst = arith.constant 11.3137083 : f32
    %6 = vector.broadcast %cst : f32 to vector<1x128xf32>
    %7 = arith.mulf %5, %6 : vector<1x128xf32>
    %8 = arith.index_cast %c0_i32 : i32 to index
    %c0_0 = arith.constant 0 : index
    %9 = vector.load %arg3[%8, %c0_0] : memref<8x128xf32, #tpu.memory_space<vmem>>, vector<1x128xf32>
    tpu.vector_store %arg3[%8, %c0_0], %7 {strides = array<i32>} : memref<8x128xf32, #tpu.memory_space<vmem>>, vector<1x128xf32>,
    %c1_i32 = arith.constant 1 : i32
    %10 = arith.addi %0, %c1_i32 : i32
    %11 = arith.index_cast %10 : i32 to index
    %12 = memref.load %arg1[%11] : memref<16xi32, #tpu.memory_space<smem>>
    %13 = arith.index_cast %12 : i32 to index
    %c0_1 = arith.constant 0 : index
    %14 = vector.load %arg2[%13, %c0_1] : memref<50x128xf32, #tpu.memory_space<vmem>>, vector<1x128xf32>
    %cst_2 = arith.constant 11.3137083 : f32
    %15 = vector.broadcast %cst_2 : f32 to vector<1x128xf32>
    %16 = arith.mulf %14, %15 : vector<1x128xf32>
    %17 = arith.index_cast %c1_i32 : i32 to index
    %c0_3 = arith.constant 0 : index
    %18 = vector.load %arg3[%17, %c0_3] : memref<8x128xf32, #tpu.memory_space<vmem>>, vector<1x128xf32>
    tpu.vector_store %arg3[%17, %c0_3], %16 {strides = array<i32>} : memref<8x128xf32, #tpu.memory_space<vmem>>, vector<1x128xf32>,
    %c2_i32 = arith.constant 2 : i32
    %19 = arith.addi %0, %c2_i32 : i32
    %20 = arith.index_cast %19 : i32 to index
    %21 = memref.load %arg1[%20] : memref<16xi32, #tpu.memory_space<smem>>
    %22 = arith.index_cast %21 : i32 to index
    %c0_4 = arith.constant 0 : index
    %23 = vector.load %arg2[%22, %c0_4] : memref<50x128xf32, #tpu.memory_space<vmem>>, vector<1x128xf32>
    %cst_5 = arith.constant 11.3137083 : f32
    %24 = vector.broadcast %cst_5 : f32 to vector<1x128xf32>
    %25 = arith.mulf %23, %24 : vector<1x128xf32>
    %26 = arith.index_cast %c2_i32 : i32 to index
    %c0_6 = arith.constant 0 : index
    %27 = vector.load %arg3[%26, %c0_6] : memref<8x128xf32, #tpu.memory_space<vmem>>, vector<1x128xf32>
    tpu.vector_store %arg3[%26, %c0_6], %25 {strides = array<i32>} : memref<8x128xf32, #tpu.memory_space<vmem>>, vector<1x128xf32>,
    %c3_i32 = arith.constant 3 : i32
    %28 = arith.addi %0, %c3_i32 : i32
    %29 = arith.index_cast %28 : i32 to index
    %30 = memref.load %arg1[%29] : memref<16xi32, #tpu.memory_space<smem>>
    %31 = arith.index_cast %30 : i32 to index
    %c0_7 = arith.constant 0 : index
    %32 = vector.load %arg2[%31, %c0_7] : memref<50x128xf32, #tpu.memory_space<vmem>>, vector<1x128xf32>
    %cst_8 = arith.constant 11.3137083 : f32
    %33 = vector.broadcast %cst_8 : f32 to vector<1x128xf32>
    %34 = arith.mulf %32, %33 : vector<1x128xf32>
    %35 = arith.index_cast %c3_i32 : i32 to index
    %c0_9 = arith.constant 0 : index
    %36 = vector.load %arg3[%35, %c0_9] : memref<8x128xf32, #tpu.memory_space<vmem>>, vector<1x128xf32>
    tpu.vector_store %arg3[%35, %c0_9], %34 {strides = array<i32>} : memref<8x128xf32, #tpu.memory_space<vmem>>, vector<1x128xf32>,
    %c4_i32 = arith.constant 4 : i32
    %37 = arith.addi %0, %c4_i32 : i32
    %38 = arith.index_cast %37 : i32 to index
    %39 = memref.load %arg1[%38] : memref<16xi32, #tpu.memory_space<smem>>
    %40 = arith.index_cast %39 : i32 to index
    %c0_10 = arith.constant 0 : index
    %41 = vector.load %arg2[%40, %c0_10] : memref<50x128xf32, #tpu.memory_space<vmem>>, vector<1x128xf32>
    %cst_11 = arith.constant 11.3137083 : f32
    %42 = vector.broadcast %cst_11 : f32 to vector<1x128xf32>
    %43 = arith.mulf %41, %42 : vector<1x128xf32>
    %44 = arith.index_cast %c4_i32 : i32 to index
    %c0_12 = arith.constant 0 : index
    %45 = vector.load %arg3[%44, %c0_12] : memref<8x128xf32, #tpu.memory_space<vmem>>, vector<1x128xf32>
    tpu.vector_store %arg3[%44, %c0_12], %43 {strides = array<i32>} : memref<8x128xf32, #tpu.memory_space<vmem>>, vector<1x128xf32>,
    %c5_i32 = arith.constant 5 : i32
    %46 = arith.addi %0, %c5_i32 : i32
    %47 = arith.index_cast %46 : i32 to index
    %48 = memref.load %arg1[%47] : memref<16xi32, #tpu.memory_space<smem>>
    %49 = arith.index_cast %48 : i32 to index
    %c0_13 = arith.constant 0 : index
    %50 = vector.load %arg2[%49, %c0_13] : memref<50x128xf32, #tpu.memory_space<vmem>>, vector<1x128xf32>
    %cst_14 = arith.constant 11.3137083 : f32
    %51 = vector.broadcast %cst_14 : f32 to vector<1x128xf32>
    %52 = arith.mulf %50, %51 : vector<1x128xf32>
    %53 = arith.index_cast %c5_i32 : i32 to index
    %c0_15 = arith.constant 0 : index
    %54 = vector.load %arg3[%53, %c0_15] : memref<8x128xf32, #tpu.memory_space<vmem>>, vector<1x128xf32>
    tpu.vector_store %arg3[%53, %c0_15], %52 {strides = array<i32>} : memref<8x128xf32, #tpu.memory_space<vmem>>, vector<1x128xf32>,
    %c6_i32 = arith.constant 6 : i32
    %55 = arith.addi %0, %c6_i32 : i32
    %56 = arith.index_cast %55 : i32 to index
    %57 = memref.load %arg1[%56] : memref<16xi32, #tpu.memory_space<smem>>
    %58 = arith.index_cast %57 : i32 to index
    %c0_16 = arith.constant 0 : index
    %59 = vector.load %arg2[%58, %c0_16] : memref<50x128xf32, #tpu.memory_space<vmem>>, vector<1x128xf32>
    %cst_17 = arith.constant 11.3137083 : f32
    %60 = vector.broadcast %cst_17 : f32 to vector<1x128xf32>
    %61 = arith.mulf %59, %60 : vector<1x128xf32>
    %62 = arith.index_cast %c6_i32 : i32 to index
    %c0_18 = arith.constant 0 : index
    %63 = vector.load %arg3[%62, %c0_18] : memref<8x128xf32, #tpu.memory_space<vmem>>, vector<1x128xf32>
    tpu.vector_store %arg3[%62, %c0_18], %61 {strides = array<i32>} : memref<8x128xf32, #tpu.memory_space<vmem>>, vector<1x128xf32>,
    %c7_i32 = arith.constant 7 : i32
    %64 = arith.addi %0, %c7_i32 : i32
    %65 = arith.index_cast %64 : i32 to index
    %66 = memref.load %arg1[%65] : memref<16xi32, #tpu.memory_space<smem>>
    %67 = arith.index_cast %66 : i32 to index
    %c0_19 = arith.constant 0 : index
    %68 = vector.load %arg2[%67, %c0_19] : memref<50x128xf32, #tpu.memory_space<vmem>>, vector<1x128xf32>
    %cst_20 = arith.constant 11.3137083 : f32
    %69 = vector.broadcast %cst_20 : f32 to vector<1x128xf32>
    %70 = arith.mulf %68, %69 : vector<1x128xf32>
    %71 = arith.index_cast %c7_i32 : i32 to index
    %c0_21 = arith.constant 0 : index
    %72 = vector.load %arg3[%71, %c0_21] : memref<8x128xf32, #tpu.memory_space<vmem>>, vector<1x128xf32>
    tpu.vector_store %arg3[%71, %c0_21], %70 {strides = array<i32>} : memref<8x128xf32, #tpu.memory_space<vmem>>, vector<1x128xf32>,
    %c8_i32_22 = arith.constant 8 : i32
    return
  }
  func.func @transform_0(%arg0: i32, %arg1: memref<16xi32, #tpu.memory_space<smem>>) -> (i32, i32) {
    %c0_i32 = arith.constant 0 : i32
    %c0_i32_0 = arith.constant 0 : i32
    %c0_i32_1 = arith.constant 0 : i32
    return %c0_i32, %c0_i32_0 : i32, i32
  }
  func.func @transform_1(%arg0: i32, %arg1: memref<16xi32, #tpu.memory_space<smem>>) -> (i32, i32) {
    %c0_i32 = arith.constant 0 : i32
    %c0_i32_0 = arith.constant 0 : i32
    return %arg0, %c0_i32 : i32, i32
  }
}

</mosaic_0001>

<bundles_post_ra>
// kernel: tpu_custom_call.1
= control target key start
LH: loop header
LB: loop body
LE: loop exit
PB: predicated region body
PF: predicated region fallthrough
CT: control target
= control target key end

     0   :  { %s594_s0 = inlined_call_operand.hbm [shape: s32[16], index: 0, kind: input, shape index: {}]   ;;  %s595_s1 = inlined_call_operand.hbm [shape: f32[50,128], index: 1, kind: input, shape index: {}]   ;;  %s596_s2 = inlined_call_operand.hbm [shape: f32[16,128], index: 2, kind: output, shape index: {}]  }
   0x1   :  { %s308_s11 = scalar_lea.hbm %s594_s0, 16 }
   0x2   :  { %p309_p0 = scmp.ne.s32.totalorder %s594_s0, %s308_s11  ;;  %p312_p1 = scmp.lt.u32.totalorder %s308_s11, %s594_s0 }
   0x4   :  { %p314_p2 = pnand %p312_p1, %p309_p0 }
   0x6   :  { %317 = shalt.err (!%p314_p2)  }
   0x7   :  { %s416_s16 = smov [#allocation3]  }
   0x8   :  { %8 = dma.hbm_to_smem %s594_s0, 16, %s416_s16, [#allocation2] }
   0x9   :  { %390 = dma.done.wait [#allocation2], 16 }
   0xa   :  { %391 = vsyncadd [#allocation2], 4294967280 }
   0xb   :  { %10 = sfence }
   0xc   :  { %11 = vsyncpa [#allocation5], 0 }
   0xd   :  { %12 = vsyncpa [#allocation6], 0 }
   0xe   :  { %14 = vsyncpa [#allocation6 + $0x1], 0  ;;  %s448_s19 = smov 0   ;;  %s450_s20 = smov 0  }
   0xf   :  { %s452_s21 = smov 0   ;;  %s454_s22 = smov 0  }
  0x10 LB: > { %s469_s0 = sadd.s32 4294967295, %s414_s22   ;;  %s244_s23 = sadd.s32 4294967294, %s414_s22   ;;  %s414_s22 = sphi %s454_s22, %s612_s22   ;;  %s410_s21 = sphi %s452_s21, %s611_s21   ;;  %s406_s20 = sphi %s450_s20, %s610_s20   ;;  %s402_s19 = sphi %s448_s19, %s609_s19  }
  0x11   : > { %s473_s24 = sadd.s32 1, %s414_s22   ;;  %s48_s25 = sadd.s32 1, %s410_s21 }
  0x12   : > { %s45_s26 = ssub.s32 %s414_s22, %s473_s24  ;;  %p58_p3 = scmp.ne.s32.totalorder %s410_s21, %s406_s20 }
  0x13   : > { %p46_p4 = scmp.eq.s32.totalorder %s45_s26, 0  ;;  %p59_p5 = scmp.eq.s32.totalorder %s469_s0, 1 }
  0x14   : > { %p64_p6 = scmp.ne.s32.totalorder %s406_s20, %s402_s19  ;;  %p65_p7 = scmp.eq.s32.totalorder %s244_s23, 1 }
  0x15   : > { %s484_s27 = scalar_select %p46_p4, %s410_s21, %s48_s25  }
  0x16   : > { %p486_p8 = por %p59_p5, %p58_p3  ;;  %p490_p9 = por %p65_p7, %p64_p6 }
  0x17   : > { %p245_p10 = scmp.ge.s32.totalorder %s414_s22, 1  ;;  %p72_p11 = scmp.lt.s32.totalorder %s414_s22, 3 }
  0x18   : > { %s600_s28 = scalar_select %p486_p8, 1, 0 }
  0x19   : > { %s601_s29 = scalar_select %p490_p9, 1, 0 }
  0x1a   : > { %p597_p12 = scmp.eq.s32.totalorder %s469_s0, 0  ;;  %p497_p13 = pnand %p245_p10, %p72_p11 }
  0x1b   : > { %s417_s3 = smov [#allocation4]   ;;  %s318_s8 = scalar_lea.hbm %s595_s1, 896 }
  0x1c   : > { %s602_s30 = scalar_select %p497_p13, 1, 0 }
  0x1d   : > { %s84_s4 = sshll.u32 %s417_s3, 4  ;;  %p261_p0 = pneg %p497_p13  ;;  %s85_s4 = int_to_ptr.vmem [resolvable:$true] %s84_s4 }
  0x1e   : > { %p319_p2 = scmp.ne.s32.totalorder %s595_s1, %s318_s8  ;;  %p325_p6 = scmp.lt.u32.totalorder %s318_s8, %s595_s1 }
  0x1f   : > { %p505_p1 = pnand %p597_p12, %p261_p0 }
  0x21   : > { %p320_p3 = pneg %p505_p1 }
  0x23   : > { %p321_p4 = pnand %p320_p3, %p319_p2 }
  0x25   : > { %p322_p5 = pneg %p321_p4 }
  0x27   : > { %p327_p7 = pnand %p325_p6, %p322_p5 }
  0x29   : > { %330 = shalt.err (!%p327_p7)
}
  0x2a   : > { %s331_s13 = scalar_lea.vmem %s85_s4, 896  ;;  %p339_p12 = scmp.lt.s32.totalorder %s85_s4, %s85_s4 }
  0x2b   : > { %p332_p10 = scmp.ne.s32.totalorder %s85_s4, %s331_s13  ;;  %p340_p9 = scmp.lt.s32.totalorder %s331_s13, %s331_s13 }
  0x2d   : > { %p334_p11 = pnand %p332_p10, %p320_p3  ;;  %p341_p8 = por %p340_p9, %p339_p12 }
  0x2f   : > { %p335_p0 = pneg %p334_p11 }
  0x31   : > { %p342_p13 = pnand %p341_p8, %p335_p0 }
  0x33   : > { %345 = shalt.err (!%p342_p13)
}
  0x34   : > { %s418_s14 = smov 128   ;;  %s419_s15 = smov 8  }
  0x35   : > { %264 = dma.hbm_to_vmem [thread:$0]  (!%p505_p1), %s595_s1, 896, %s85_s4, [#allocation5], %s418_s14, %s418_s14, %s419_s15  }
  0x36   : > { %p604_p2 = scmp.ne.s32.totalorder %s602_s30, 0 }
  0x37   : > { %p605_p4 = scmp.eq.s32.totalorder (!%p604_p2), %s469_s0, 0 }
  0x38   : > { %100 = sbr.rel (%p604_p2) target bundleno = 105 (0x69), region = 24 }
  0x3f   : > { %393 = dma.done.wait (%p605_p4), [#allocation5], 896   ;;  %p606_p3 = pmov %p605_p4 }
  0x40   : > { %s112_s18 = sand.u32 1, %s406_s20   ;;  %s250_s23 = sshll.u32 %s469_s0, 3 }
  0x41   : > { %395 = vsyncadd (%p606_p3), [#allocation5], 4294966400  ;;  %s249_s25 = sshll.u32 %s112_s18, 3  ;;  %s116_s26 = sld [smem:[#allocation3 + %s250_s23]] }
  0x42   : > { %s121_s3 = sadd.s32 1, %s250_s23  ;;  %s127_s5 = sadd.s32 2, %s250_s23 }
  0x43   : > { %s122_s4 = sld [smem:[#allocation3 + %s121_s3]]  ;;  %s133_s30 = sadd.s32 3, %s250_s23 }
  0x44   : > { %s128_s6 = sld [smem:[#allocation3 + %s127_s5]]  ;;  %s139_s7 = sadd.s32 4, %s250_s23 }
  0x45   : > { %s134_s8 = sld [smem:[#allocation3 + %s133_s30]]  ;;  %s145_s10 = sadd.s32 5, %s250_s23 }
  0x46   : > { %s140_s9 = sld [smem:[#allocation3 + %s139_s7]]  ;;  %s151_s13 = sadd.s32 6, %s250_s23 }
  0x47   : > { %s117_s11 = scalar_lea.vmem [#allocation4], %s116_s26  ;;  %s146_s12 = sld [smem:[#allocation3 + %s145_s10]] }
  0x48   : > { %v118_v0 = vld [vmem:[%s117_s11] sm:$0x1]  ;;  %s152_s14 = sld [smem:[#allocation3 + %s151_s13]]  ;;  %s157_s15 = sadd.s32 7, %s250_s23 }
  0x49   : > { %v119_v1 = vmul.f32 11.313708, %v118_v0  ;;  %s535_s16 = scalar_lea.vmem [#allocation7], %s249_s25  ;;  %s123_s17 = scalar_lea.vmem [#allocation4], %s122_s4 }
  0x4a   : > { %v124_v2 = vld [vmem:[%s123_s17] sm:$0x1]  ;;  %s129_s3 = scalar_lea.vmem [#allocation4], %s128_s6  ;;  %s158_s5 = sld [smem:[#allocation3 + %s157_s15]] }
  0x4b   : > { %120 = vst [vmem:[%s535_s16] sm:$0x1] %v119_v1  ;;  %v130_v3 = vld [vmem:[%s129_s3] sm:$0x1]  ;;  %v125_v4 = vmul.f32 11.313708, %v124_v2  ;;  %s135_s26 = scalar_lea.vmem [#allocation4], %s134_s8 }
  0x4c   : > { %v131_v5 = vmul.f32 11.313708, %v130_v3  ;;  %v136_v6 = vld [vmem:[%s135_s26] sm:$0x1]  ;;  %s141_s23 = scalar_lea.vmem [#allocation4], %s140_s9  ;;  %s252_s6 = sshll.u32 %s469_s0, 7 }
  0x4d   : > { %v142_v7 = vld [vmem:[%s141_s23] sm:$0x1]  ;;  %126 = vst [vmem:[%s535_s16 + $0x1] sm:$0x1] %v125_v4  ;;  %v137_v8 = vmul.f32 11.313708, %v136_v6  ;;  %s549_s10 = scalar_lea.hbm %s596_s2, %s252_s6 }
  0x4e   : > { %132 = vst [vmem:[%s535_s16 + $0x2] sm:$0x1] %v131_v5  ;;  %v143_v9 = vmul.f32 11.313708, %v142_v7  ;;  %s147_s25 = scalar_lea.vmem [#allocation4], %s146_s12  ;;  %s153_s4 = scalar_lea.vmem [#allocation4], %s152_s14 }
  0x4f   : > { %v148_v10 = vld [vmem:[%s147_s25] sm:$0x1]  ;;  %138 = vst [vmem:[%s535_s16 + $0x3] sm:$0x1] %v137_v8  ;;  %s177_s30 = sshll.u32 %s535_s16, 4  ;;  %s164_s0 = scalar_lea.sflag [#allocation6], %s112_s18  ;;  %s551_s30 = int_to_ptr.vmem [resolvable:$true] %s177_s30 }
  0x50   : > { %144 = vst [vmem:[%s535_s16 + $0x4] sm:$0x1] %v143_v9  ;;  %v149_v11 = vmul.f32 11.313708, %v148_v10  ;;  %v154_v12 = vld [vmem:[%s153_s4] sm:$0x1] }
  0x51   : > { %v155_v13 = vmul.f32 11.313708, %v154_v12  ;;  %s159_s7 = scalar_lea.vmem [#allocation4], %s158_s5  ;;  %s346_s11 = scalar_lea.vmem %s551_s30, 128 }
  0x52   : > { %150 = vst [vmem:[%s535_s16 + $0x5] sm:$0x1] %v149_v11  ;;  %v160_v14 = vld [vmem:[%s159_s7] sm:$0x1]  ;;  %p347_p8 = scmp.ne.s32.totalorder %s551_s30, %s346_s11  ;;  %p607_p9 = scmp.ne.s32.totalorder %s600_s28, 0 }
  0x53   : > { %156 = vst [vmem:[%s535_s16 + $0x6] sm:$0x1] %v155_v13  ;;  %v161_v15 = vmul.f32 11.313708, %v160_v14  ;;  %s420_s12 = smov [#allocation7]  }
  0x54   : > { %p348_p12 = pnand %p347_p8, %p607_p9  ;;  %s350_s13 = sshll.u32 %s420_s12, 4  ;;  %s351_s13 = int_to_ptr.vmem [resolvable:$false] %s350_s13 }
  0x55   : > { %162 = vst [vmem:[%s535_s16 + $0x7] sm:$0x1] %v161_v15  ;;  %s352_s14 = scalar_lea.vmem %s351_s13, 256  ;;  %p353_p1 = scmp.lt.s32.totalorder %s551_s30, %s351_s13 }
  0x56   : > { %p349_p13 = pneg %p348_p12  ;;  %p354_p5 = scmp.lt.s32.totalorder %s352_s14, %s346_s11 }
  0x58   : > { %p355_p6 = por %p354_p5, %p353_p1 }
  0x5a   : > { %p356_p7 = pnand %p355_p6, %p349_p13 }
  0x5c   : > { %359 = shalt.err (!%p356_p7)
}
  0x5d   : > { %s360_s18 = scalar_lea.hbm %s549_s10, 128  ;;  %s364_s17 = scalar_lea.hbm %s596_s2, 256 }
  0x5e   : > { %p361_p10 = scmp.ne.s32.totalorder %s549_s10, %s360_s18  ;;  %p365_p2 = scmp.lt.u32.totalorder %s549_s10, %s596_s2 }
  0x5f   : > { %p366_p4 = scmp.lt.u32.totalorder %s364_s17, %s360_s18  ;;  %p368_p8 = scmp.lt.u32.totalorder %s360_s18, %s549_s10 }
  0x60   : > { %p362_p11 = pnand %p361_p10, %p607_p9 }
  0x61   : > { %p367_p3 = por %p366_p4, %p365_p2 }
  0x62   : > { %p363_p0 = pneg %p362_p11 }
  0x63   : > { %p369_p12 = por %p368_p8, %p367_p3 }
  0x65   : > { %p370_p13 = pnand %p369_p12, %p363_p0 }
  0x67   : > { %373 = shalt.err (!%p370_p13)
}
  0x68   : > { %259 = dma.vmem_to_hbm [thread:$0]  (%p607_p9), %s551_s30, 128, %s549_s10, %s164_s0  }
  0x69 PF: > { %p271_p1 = scmp.ge.s32.totalorder %s414_s22, 2  ;;  %s189_s26 = sand.u32 1, %s402_s19  }
  0x6a   : > { %p608_p5 = scmp.ne.s32.totalorder %s601_s29, 0  ;;  %s190_s23 = scalar_lea.sflag [#allocation6], %s189_s26 }
  0x6c   : > { %p266_p6 = pnand %p271_p1, %p608_p5 }
  0x6e   : > { %397 = dma.done.wait (!%p266_p6), %s190_s23, 128  }
  0x6f   : > { %399 = vsyncadd (!%p266_p6), %s190_s23, 4294967168  ;;  %p17_p7 = scmp.ge.s32.totalorder %s473_s24, 4   ;;  %s609_s19 = smov %s406_s20 }
  0x70   : > { %s610_s20 = smov %s410_s21  ;;  %s611_s21 = smov %s484_s27 }
  0x71   : > { %s612_s22 = smov %s473_s24  ;;  %19 = sbr.rel (!%p17_p7) target bundleno = 16 (0x10), region = 69 }
  0x78   :  { %195 = vsyncpa [#allocation5], 1 }
  0x79   :  { %197 = vsyncpa [#allocation5 + $0x1], 1 }
  0x7a   :  { %198 = vsyncpa [#allocation6], 1 }
  0x7b   :  { %200 = vsyncpa [#allocation6 + $0x1], 1 }

</bundles_post_ra>
